<compile_context>
chip_gen: v6e
topology: v6e:2x2x1
jax: 0.10.0
libtpu: 0.0.40
codegen_flags: <defaults>
</compile_context>

<pallas_src>
import jax
import jax.numpy as jnp
from jax.experimental import pallas as pl
from jax.experimental.pallas import tpu as pltpu

NUM_GROUPS = 32     # normalization(channels) == GroupNorm32(32, channels)
EPS = 1e-5
NEG_INF = -1e30     # finite "masked" bias (avoids inf-inf -> NaN edge cases)


# --------------------------------------------------------------------------------------
# Fused RPENet kernel: computes R_k, R_q, R_v in one pass per batch element.
#   emb  = Linear(temb) + Linear(dist_feats)        (first layers concatenated -> 3C)
#   R_n  = Linear_n(SiLU(emb_n))                    (three C->C out projections)
# --------------------------------------------------------------------------------------
def _rpe_net_fused_kernel(temb_ref, demb_ref, wt_ref, bt_ref, wd_ref, bd_ref,
                          wo_ref, bo_ref, r_ref):
    temb = temb_ref[0]                     # (T, E)
    demb = demb_ref[0]                     # (T, T, 3)
    T = demb.shape[0]
    C3 = wt_ref.shape[1]
    C = C3 // 3

    t_emb = jnp.dot(temb, wt_ref[...], preferred_element_type=jnp.float32) + bt_ref[...]
    d_emb = jnp.dot(demb.reshape(T * T, 3), wd_ref[...],
                    preferred_element_type=jnp.float32) + bd_ref[...]
    emb = t_emb[:, None, :] + d_emb.reshape(T, T, C3)          # (T, T, 3C)
    s = emb * jax.nn.sigmoid(emb)                              # SiLU
    s2 = s.reshape(T * T, C3)
    for n in range(3):                                         # tiny fixed loop (k, q, v)
        r_n = jnp.dot(s2[:, n * C:(n + 1) * C], wo_ref[n],
                      preferred_element_type=jnp.float32) + bo_ref[n]
        r_ref[0, n] = r_n.reshape(T, T, C)


def rpe_net_fused_apply(rpe_params, temb, pairwise_distances):
    """temb: (B, T, E), pairwise_distances: (B, T, T) int -> R: (B, 3, T, T, C) [k,q,v]."""
    B, T, _ = pairwise_distances.shape
    E = rpe_params['k']['wt'].shape[0]
    C = rpe_params['k']['wo'].shape[1]

    rd = pairwise_distances.astype(jnp.float32)
    demb = jnp.stack([jnp.log1p(jnp.maximum(rd, 0.0)),
                      jnp.log1p(jnp.maximum(-rd, 0.0)),
                      (rd == 0).astype(jnp.float32)], axis=-1)         # (B, T, T, 3)

    order = ('k', 'q', 'v')
    wt = jnp.concatenate([rpe_params[n]['wt'] for n in order], axis=1)  # (E, 3C)
    bt = jnp.concatenate([rpe_params[n]['bt'] for n in order], axis=1)  # (1, 3C)
    wd = jnp.concatenate([rpe_params[n]['wd'] for n in order], axis=1)  # (3, 3C)
    bd = jnp.concatenate([rpe_params[n]['bd'] for n in order], axis=1)  # (1, 3C)
    wo = jnp.stack([rpe_params[n]['wo'] for n in order], axis=0)        # (3, C, C)
    bo = jnp.stack([rpe_params[n]['bo'] for n in order], axis=0)        # (3, 1, C)

    in_specs = [
        pl.BlockSpec((1, T, E), lambda b: (b, 0, 0)),
        pl.BlockSpec((1, T, T, 3), lambda b: (b, 0, 0, 0)),
        pl.BlockSpec((E, 3 * C), lambda b: (0, 0)),
        pl.BlockSpec((1, 3 * C), lambda b: (0, 0)),
        pl.BlockSpec((3, 3 * C), lambda b: (0, 0)),
        pl.BlockSpec((1, 3 * C), lambda b: (0, 0)),
        pl.BlockSpec((3, C, C), lambda b: (0, 0, 0)),
        pl.BlockSpec((3, 1, C), lambda b: (0, 0, 0)),
    ]
    return pl.pallas_call(
        _rpe_net_fused_kernel,
        grid=(B,),
        in_specs=in_specs,
        out_specs=pl.BlockSpec((1, 3, T, T, C), lambda b: (b, 0, 0, 0, 0)),
        out_shape=jax.ShapeDtypeStruct((B, 3, T, T, C), jnp.float32),
        compiler_params=pltpu.CompilerParams(dimension_semantics=("parallel",)),
    )(temb, demb, wt, bt, wd, bd, wo, bo)


# --------------------------------------------------------------------------------------
# Fused RPEAttention kernel per (batch, D-tile): GroupNorm -> qkv -> head-batched
# attention (+RPE, +mask) -> softmax -> AV (+RPE_v) -> proj -> residual (onto normed x,
# as in the reference RPEAttention._forward).
# --------------------------------------------------------------------------------------
def _make_rpe_attention_kernel(num_heads, scale, has_rpe, has_mask, allow_pad_interactions):
    def kernel(*refs):
        x_ref, nw_ref, nb_ref, qw_ref, qb_ref, pw_ref, pb_ref = refs[:7]
        i = 7
        r_ref = mask_ref = None
        if has_rpe:
            r_ref = refs[i]; i += 1
        if has_mask:
            mask_ref = refs[i]; i += 1
        o_ref = refs[i]

        x = x_ref[0]                       # (TD, T, C) float32, channel-last
        TD, T, C = x.shape
        H = num_heads
        F = C // H
        G = NUM_GROUPS
        Cg = C // G

        # ---- GroupNorm(32, C): single-pass moments over (T, group-channels) per d ----
        cidx = jax.lax.broadcasted_iota(jnp.int32, (C, G), 0) // Cg
        gidx = jax.lax.broadcasted_iota(jnp.int32, (C, G), 1)
        gmat = (cidx == gidx).astype(jnp.float32)                       # (C, G) group map
        xsum = jnp.sum(x, axis=1)                                       # (TD, C)
        xsq = jnp.sum(x * x, axis=1)                                    # (TD, C)
        s1 = jnp.dot(xsum, gmat, preferred_element_type=jnp.float32)    # (TD, G)
        s2 = jnp.dot(xsq, gmat, preferred_element_type=jnp.float32)
        cnt = float(T * Cg)
        mean_g = s1 / cnt
        var_g = s2 / cnt - mean_g * mean_g
        inv_g = jax.lax.rsqrt(var_g + EPS)
        mean_c = jnp.dot(mean_g, gmat.T, preferred_element_type=jnp.float32)  # (TD, C)
        inv_c = jnp.dot(inv_g, gmat.T, preferred_element_type=jnp.float32)
        xn = (x - mean_c[:, None, :]) * inv_c[:, None, :]
        xn = xn * nw_ref[...] + nb_ref[...]                             # (1, C) affine

        xt2 = xn.reshape(TD * T, C)

        # ---- qkv projection: one (TD*T, C) x (C, 3C) GEMM -----------------------------
        qkv = jnp.dot(xt2, qw_ref[...], preferred_element_type=jnp.float32) + qb_ref[...]

        def split_heads(m2):               # (TD*T, C) -> (TD, H, T, F)
            m = m2.reshape(TD, T, C)
            m = jnp.swapaxes(m, 1, 2)      # (TD, C, T)
            m = m.reshape(TD, H, F, T)
            return jnp.swapaxes(m, 2, 3)   # (TD, H, T, F)

        q4 = split_heads(qkv[:, 0:C]) * scale
        k4 = split_heads(qkv[:, C:2 * C])
        v4 = split_heads(qkv[:, 2 * C:3 * C])

        # ---- head-batched attention scores: (TD*H) batched (T,F)x(F,T) on the MXU ----
        attn = jnp.einsum('btf,bsf->bts',
                          q4.reshape(TD * H, T, F), k4.reshape(TD * H, T, F),
                          preferred_element_type=jnp.float32).reshape(TD, H, T, T)

        if has_rpe:
            r = r_ref[0]                   # (3, T, T, C): [R_k, R_q^(t<->s swapped), R_v]

            def r_heads(rt):               # (T, S, C) -> (H, T, S, F)
                rr = rt.reshape(T * T, C).T          # (C, T*S)
                rr = rr.reshape(H, F, T * T)
                rr = jnp.swapaxes(rr, 1, 2)          # (H, T*S, F)
                return rr.reshape(H, T, T, F)

            rk = r_heads(r[0])             # rk[h,t,s,f]  = R_k[t,s,h,f]
            rqt = r_heads(r[1])            # rqt[h,t,s,f] = R_q[s,t,h,f]
            rv = r_heads(r[2])             # rv[h,t,s,f]  = R_v[t,s,h,f]

            # rpe_k: attn[d,h,t,s] += sum_f q[d,h,t,f]        * R_k[t,s,h,f]
            attn = attn + jnp.sum(q4[:, :, :, None, :] * rk[None], axis=-1)
            # rpe_q: attn[d,h,t,s] += sum_f (k*scale)[d,h,s,f] * R_q[s,t,h,f]
            attn = attn + jnp.sum((k4 * scale)[:, :, None, :, :] * rqt[None], axis=-1)

        if has_mask:
            mrow = mask_ref[...]                       # (1, T), 1.0 = real frame
            mcol = mrow.T                              # (T, 1)
            allowed = mcol * mrow                      # (T, T)
            if allow_pad_interactions:
                allowed = allowed + (1.0 - mcol) * (1.0 - mrow)
            else:
                ii = jax.lax.broadcasted_iota(jnp.int32, (T, T), 0)
                jj = jax.lax.broadcasted_iota(jnp.int32, (T, T), 1)
                allowed = jnp.where(ii == jj, 1.0, allowed)
            bias = jnp.where(allowed > 0.5, 0.0, NEG_INF)
            attn = attn + bias[None, None, :, :]

        # ---- softmax over s (float32) -------------------------------------------------
        mmax = jnp.max(attn, axis=-1, keepdims=True)
        p = jnp.exp(attn - mmax)
        denom = jnp.sum(p, axis=-1, keepdims=True)
        p = p * pl.reciprocal(denom, approx=True)

        out = jnp.einsum('bts,bsf->btf',
                         p.reshape(TD * H, T, T), v4.reshape(TD * H, T, F),
                         preferred_element_type=jnp.float32).reshape(TD, H, T, F)

        if has_rpe:
            # rpe_v: out[d,h,t,f] += sum_s p[d,h,t,s] * R_v[t,s,h,f]
            out = out + jnp.sum(p[:, :, :, :, None] * rv[None], axis=3)

        # ---- merge heads, output projection, residual ---------------------------------
        o = jnp.swapaxes(out, 2, 3).reshape(TD, C, T)       # (TD, H, F, T) -> (TD, C, T)
        o = jnp.swapaxes(o, 1, 2).reshape(TD * T, C)        # (TD, T, C)   -> (TD*T, C)
        o = jnp.dot(o, pw_ref[...], preferred_element_type=jnp.float32) + pb_ref[...]
        # NOTE: reference RPEAttention adds the residual onto the *normalised* x.
        y = xt2 + o
        o_ref[0] = y.reshape(TD, T, C)
    return kernel


def rpe_attention_apply(params, x, *, num_heads, temb=None, frame_indices=None,
                        attn_mask=None, rpe_params=None,
                        allow_interactions_between_padding=True,
                        d_tile=64, vmem_limit_bytes=48 * 1024 * 1024):
    """x: (B, D, T, C) channel-last -> (B, D, T, C)."""
    B, D, T, C = x.shape
    scale = (C // num_heads) ** (-0.5)
    has_rpe = rpe_params is not None
    has_mask = attn_mask is not None

    td = min(D, d_tile)
    while D % td != 0:          # keep full tiles (shapes here are small & regular)
        td -= 1
    n_d = D // td

    args = [x, params['norm_w'], params['norm_b'],
            params['qkv_w'], params['qkv_b'],
            params['proj_w'], params['proj_b']]
    in_specs = [
        pl.BlockSpec((1, td, T, C), lambda b, d: (b, d, 0, 0)),
        pl.BlockSpec((1, C), lambda b, d: (0, 0)),
        pl.BlockSpec((1, C), lambda b, d: (0, 0)),
        pl.BlockSpec((C, 3 * C), lambda b, d: (0, 0)),
        pl.BlockSpec((1, 3 * C), lambda b, d: (0, 0)),
        pl.BlockSpec((C, C), lambda b, d: (0, 0)),
        pl.BlockSpec((1, C), lambda b, d: (0, 0)),
    ]

    if has_rpe:
        pairwise = (frame_indices[:, :, None] - frame_indices[:, None, :]).astype(jnp.int32)
        r_all = rpe_net_fused_apply(rpe_params, temb, pairwise)        # (B, 3, T, T, C)
        # pre-swap R_q's (t, s) in XLA so the kernel never permutes leading axes
        r_all = jnp.stack([r_all[:, 0], jnp.swapaxes(r_all[:, 1], 1, 2), r_all[:, 2]],
                          axis=1)
        args.append(r_all)
        in_specs.append(pl.BlockSpec((1, 3, T, T, C), lambda b, d: (b, 0, 0, 0, 0)))

    if has_mask:
        args.append(attn_mask.astype(jnp.float32).reshape(B, T))
        in_specs.append(pl.BlockSpec((1, T), lambda b, d: (b, 0)))

    kernel = _make_rpe_attention_kernel(num_heads, scale, has_rpe, has_mask,
                                        allow_interactions_between_padding)
    return pl.pallas_call(
        kernel,
        grid=(B, n_d),
        in_specs=in_specs,
        out_specs=pl.BlockSpec((1, td, T, C), lambda b, d: (b, d, 0, 0)),
        out_shape=jax.ShapeDtypeStruct((B, D, T, C), jnp.float32),
        compiler_params=pltpu.CompilerParams(
            dimension_semantics=("parallel", "parallel"),
            vmem_limit_bytes=vmem_limit_bytes),
    )(*args)


# --------------------------------------------------------------------------------------
# FactorizedAttentionBlock forward: temporal attention (RPE + mask) then spatial.
# All layout permutes are plain XLA reshapes/transposes in the wrapper; the kernels
# always see channel-last (., T, C) tiles.
# --------------------------------------------------------------------------------------
def factorized_attention_block(params, x, attn_mask, temb, T, frame_indices, *,
                               num_heads, d_tile=64):
    BT, C, H, W = x.shape
    B = BT // T
    # (B*T, C, H, W) -> temporal layout (B, H*W, T, C)
    xt = x.reshape(B, T, C, H, W).transpose(0, 3, 4, 1, 2).reshape(B, H * W, T, C)
    mask = attn_mask.reshape(B, T)          # .flatten(start_dim=2).squeeze(dim=2)

    xt = rpe_attention_apply(params['temporal'], xt,
                             num_heads=num_heads, temb=temb,
                             frame_indices=frame_indices, attn_mask=mask,
                             rpe_params=params['temporal_rpe'],
                             allow_interactions_between_padding=False, d_tile=d_tile)

    # (B, H*W, T, C) -> spatial layout (B, T, H*W, C)
    xs = xt.reshape(B, H, W, T, C).transpose(0, 3, 1, 2, 4).reshape(B, T, H * W, C)
    xs = rpe_attention_apply(params['spatial'], xs, num_heads=num_heads, d_tile=d_tile)

    # (B, T, H*W, C) -> (B*T, C, H, W)
    return xs.reshape(B, T, H, W, C).transpose(0, 1, 4, 2, 3).reshape(BT, C, H, W)


# --------------------------------------------------------------------------------------
# Deterministic synthetic parameter init (shapes per the PyTorch __init__; Linear weights
# stored pre-transposed as (in, out)).  proj_out / RPENet.out are zero-init in PyTorch;
# here they get nonzero values so the attention/RPE path is numerically exercised.
# --------------------------------------------------------------------------------------
def _init_rpe_net(key, C, E, scale=0.05):
    k = jax.random.split(key, 6)
    return {
        'wt': scale * jax.random.normal(k[0], (E, C), jnp.float32),
        'bt': scale * jax.random.normal(k[1], (1, C), jnp.float32),
        'wd': scale * jax.random.normal(k[2], (3, C), jnp.float32),
        'bd': scale * jax.random.normal(k[3], (1, C), jnp.float32),
        'wo': scale * jax.random.normal(k[4], (C, C), jnp.float32),
        'bo': scale * jax.random.normal(k[5], (1, C), jnp.float32),
    }


def _init_attention(key, C, scale=0.05):
    k = jax.random.split(key, 4)
    return {
        'norm_w': jnp.ones((1, C), jnp.float32),
        'norm_b': jnp.zeros((1, C), jnp.float32),
        'qkv_w': scale * jax.random.normal(k[0], (C, 3 * C), jnp.float32),
        'qkv_b': scale * jax.random.normal(k[1], (1, 3 * C), jnp.float32),
        'proj_w': scale * jax.random.normal(k[2], (C, C), jnp.float32),
        'proj_b': scale * jax.random.normal(k[3], (1, C), jnp.float32),
    }


def init_params(key, C, num_heads, time_embed_dim):
    k = jax.random.split(key, 5)
    return {
        'temporal': _init_attention(k[0], C),
        'spatial': _init_attention(k[1], C),
        'temporal_rpe': {
            'q': _init_rpe_net(k[2], C, time_embed_dim),
            'k': _init_rpe_net(k[3], C, time_embed_dim),
            'v': _init_rpe_net(k[4], C, time_embed_dim),
        },
    }


if __name__ == "__main__":
    B, T, C, H, W = 2, 8, 32, 4, 4          # 16 frames of 4x4 with C=32 channels
    NUM_HEADS = 4                            # head_dim = 8
    TIME_EMBED_DIM = 16

    key = jax.random.PRNGKey(0)
    kx, kt, kp = jax.random.split(key, 3)

    x = jax.random.normal(kx, (B * T, C, H, W), jnp.float32)
    temb = jax.random.normal(kt, (B, T, TIME_EMBED_DIM), jnp.float32)
    frame_indices = jnp.tile(jnp.arange(T, dtype=jnp.int32)[None, :], (B, 1))
    attn_mask = jnp.ones((B, T, 1, 1, 1), jnp.float32)
    attn_mask = attn_mask.at[1, T - 2:].set(0.0)    # pad the last 2 frames of batch 1

    params = init_params(kp, C, NUM_HEADS, TIME_EMBED_DIM)

    out = factorized_attention_block(params, x, attn_mask, temb, T, frame_indices,
                                     num_heads=NUM_HEADS)
    out = jax.block_until_ready(out)
    assert out.shape == (B * T, C, H, W)
    assert bool(jnp.all(jnp.isfinite(out)))
    print("KERNEL_OK")
</pallas_src>

<mosaic_0001>
module attributes {stable_mosaic.version = 11 : i64} {
  func.func @_rpe_net_fused_kernel(%arg0: i32, %arg1: memref<1x8x16xf32, #tpu.memory_space<vmem>>, %arg2: memref<1x8x8x3xf32, #tpu.memory_space<vmem>>, %arg3: memref<16x96xf32, #tpu.memory_space<vmem>>, %arg4: memref<1x96xf32, #tpu.memory_space<vmem>>, %arg5: memref<3x96xf32, #tpu.memory_space<vmem>>, %arg6: memref<1x96xf32, #tpu.memory_space<vmem>>, %arg7: memref<3x32x32xf32, #tpu.memory_space<vmem>>, %arg8: memref<3x1x32xf32, #tpu.memory_space<vmem>>, %arg9: memref<1x3x8x8x32xf32, #tpu.memory_space<vmem>>) attributes {dimension_semantics = [#tpu.dimension_semantics<parallel>], iteration_bounds = array<i64: 2>, scalar_prefetch = 0 : i64, scratch_operands = 0 : i64, tpu.core_type = #tpu.core_type<tc>, window_params = [{transform_indices = @transform_0, window_bounds = array<i64: 1, 8, 16>}, {transform_indices = @transform_1, window_bounds = array<i64: 1, 8, 8, 3>}, {pipeline_mode = #tpu.pipeline_mode<synchronous>, transform_indices = @transform_2, window_bounds = array<i64: 16, 96>}, {pipeline_mode = #tpu.pipeline_mode<synchronous>, transform_indices = @transform_3, window_bounds = array<i64: 1, 96>}, {pipeline_mode = #tpu.pipeline_mode<synchronous>, transform_indices = @transform_4, window_bounds = array<i64: 3, 96>}, {pipeline_mode = #tpu.pipeline_mode<synchronous>, transform_indices = @transform_5, window_bounds = array<i64: 1, 96>}, {pipeline_mode = #tpu.pipeline_mode<synchronous>, transform_indices = @transform_6, window_bounds = array<i64: 3, 32, 32>}, {pipeline_mode = #tpu.pipeline_mode<synchronous>, transform_indices = @transform_7, window_bounds = array<i64: 3, 1, 32>}, {transform_indices = @transform_8, window_bounds = array<i64: 1, 3, 8, 8, 32>}]} {
    %c0 = arith.constant 0 : index
    %c0_0 = arith.constant 0 : index
    %c0_1 = arith.constant 0 : index
    %0 = vector.load %arg1[%c0, %c0_0, %c0_1] : memref<1x8x16xf32, #tpu.memory_space<vmem>>, vector<1x8x16xf32>
    %1 = vector.shape_cast %0 : vector<1x8x16xf32> to vector<8x16xf32>
    %c0_2 = arith.constant 0 : index
    %c0_3 = arith.constant 0 : index
    %c0_4 = arith.constant 0 : index
    %c0_5 = arith.constant 0 : index
    %2 = vector.load %arg2[%c0_2, %c0_3, %c0_4, %c0_5] : memref<1x8x8x3xf32, #tpu.memory_space<vmem>>, vector<1x8x8x3xf32>
    %3 = vector.shape_cast %2 : vector<1x8x8x3xf32> to vector<8x8x3xf32>
    %c0_6 = arith.constant 0 : index
    %c0_7 = arith.constant 0 : index
    %4 = vector.load %arg3[%c0_6, %c0_7] : memref<16x96xf32, #tpu.memory_space<vmem>>, vector<16x96xf32>
    %cst = arith.constant dense<0.000000e+00> : vector<8x96xf32>
    %5 = tpu.matmul %1, %4, %cst {dimension_numbers = #tpu.dot_dimension_numbers<[1], [0], [0], [1], [0, 0, 1, 1], [], []>} : vector<8x16xf32>, vector<16x96xf32>, vector<8x96xf32> -> vector<8x96xf32>
    %c0_8 = arith.constant 0 : index
    %c0_9 = arith.constant 0 : index
    %6 = vector.load %arg4[%c0_8, %c0_9] : memref<1x96xf32, #tpu.memory_space<vmem>>, vector<1x96xf32>
    %7 = vector.broadcast %6 : vector<1x96xf32> to vector<8x96xf32>
    %8 = arith.addf %5, %7 : vector<8x96xf32>
    %9 = vector.shape_cast %3 : vector<8x8x3xf32> to vector<64x3xf32>
    %c0_10 = arith.constant 0 : index
    %c0_11 = arith.constant 0 : index
    %10 = vector.load %arg5[%c0_10, %c0_11] : memref<3x96xf32, #tpu.memory_space<vmem>>, vector<3x96xf32>
    %cst_12 = arith.constant dense<0.000000e+00> : vector<64x96xf32>
    %11 = tpu.matmul %9, %10, %cst_12 {dimension_numbers = #tpu.dot_dimension_numbers<[1], [0], [0], [1], [0, 0, 1, 1], [], []>} : vector<64x3xf32>, vector<3x96xf32>, vector<64x96xf32> -> vector<64x96xf32>
    %c0_13 = arith.constant 0 : index
    %c0_14 = arith.constant 0 : index
    %12 = vector.load %arg6[%c0_13, %c0_14] : memref<1x96xf32, #tpu.memory_space<vmem>>, vector<1x96xf32>
    %13 = vector.broadcast %12 : vector<1x96xf32> to vector<64x96xf32>
    %14 = arith.addf %11, %13 : vector<64x96xf32>
    %15 = vector.shape_cast %8 : vector<8x96xf32> to vector<8x1x96xf32>
    %16 = vector.shape_cast %14 : vector<64x96xf32> to vector<8x8x96xf32>
    %17 = vector.broadcast %15 : vector<8x1x96xf32> to vector<8x8x96xf32>
    %18 = arith.addf %17, %16 : vector<8x8x96xf32>
    %19 = arith.negf %18 : vector<8x8x96xf32>
    %20 = math.exp %19 : vector<8x8x96xf32>
    %cst_15 = arith.constant 1.000000e+00 : f32
    %21 = vector.broadcast %cst_15 : f32 to vector<8x8x96xf32>
    %22 = arith.addf %21, %20 : vector<8x8x96xf32>
    %23 = arith.divf %21, %22 : vector<8x8x96xf32>
    %24 = arith.mulf %18, %23 : vector<8x8x96xf32>
    %25 = vector.shape_cast %24 : vector<8x8x96xf32> to vector<64x96xf32>
    %26 = vector.extract_strided_slice %25 {offsets = [0, 0], sizes = [64, 32], strides = [1, 1]} : vector<64x96xf32> to vector<64x32xf32>
    %c0_16 = arith.constant 0 : index
    %c0_17 = arith.constant 0 : index
    %c0_18 = arith.constant 0 : index
    %27 = vector.load %arg7[%c0_16, %c0_17, %c0_18] : memref<3x32x32xf32, #tpu.memory_space<vmem>>, vector<1x32x32xf32>
    %28 = vector.shape_cast %27 : vector<1x32x32xf32> to vector<32x32xf32>
    %cst_19 = arith.constant dense<0.000000e+00> : vector<64x32xf32>
    %29 = tpu.matmul %26, %28, %cst_19 {dimension_numbers = #tpu.dot_dimension_numbers<[1], [0], [0], [1], [0, 0, 1, 1], [], []>} : vector<64x32xf32>, vector<32x32xf32>, vector<64x32xf32> -> vector<64x32xf32>
    %c0_20 = arith.constant 0 : index
    %c0_21 = arith.constant 0 : index
    %c0_22 = arith.constant 0 : index
    %30 = vector.load %arg8[%c0_20, %c0_21, %c0_22] : memref<3x1x32xf32, #tpu.memory_space<vmem>>, vector<1x1x32xf32>
    %31 = vector.shape_cast %30 : vector<1x1x32xf32> to vector<1x32xf32>
    %32 = vector.broadcast %31 : vector<1x32xf32> to vector<64x32xf32>
    %33 = arith.addf %29, %32 : vector<64x32xf32>
    %34 = vector.shape_cast %33 : vector<64x32xf32> to vector<8x8x32xf32>
    %c0_23 = arith.constant 0 : index
    %c0_24 = arith.constant 0 : index
    %c0_25 = arith.constant 0 : index
    %c0_26 = arith.constant 0 : index
    %c0_27 = arith.constant 0 : index
    %35 = vector.load %arg9[%c0_23, %c0_24, %c0_25, %c0_26, %c0_27] : memref<1x3x8x8x32xf32, #tpu.memory_space<vmem>>, vector<1x1x8x8x32xf32>
    %36 = vector.shape_cast %35 : vector<1x1x8x8x32xf32> to vector<8x8x32xf32>
    %37 = vector.shape_cast %34 : vector<8x8x32xf32> to vector<1x1x8x8x32xf32>
    tpu.vector_store %arg9[%c0_23, %c0_24, %c0_25, %c0_26, %c0_27], %37 {strides = array<i32>} : memref<1x3x8x8x32xf32, #tpu.memory_space<vmem>>, vector<1x1x8x8x32xf32>,
    %38 = vector.extract_strided_slice %25 {offsets = [0, 32], sizes = [64, 32], strides = [1, 1]} : vector<64x96xf32> to vector<64x32xf32>
    %c1 = arith.constant 1 : index
    %c0_28 = arith.constant 0 : index
    %c0_29 = arith.constant 0 : index
    %39 = vector.load %arg7[%c1, %c0_28, %c0_29] : memref<3x32x32xf32, #tpu.memory_space<vmem>>, vector<1x32x32xf32>
    %40 = vector.shape_cast %39 : vector<1x32x32xf32> to vector<32x32xf32>
    %cst_30 = arith.constant dense<0.000000e+00> : vector<64x32xf32>
    %41 = tpu.matmul %38, %40, %cst_30 {dimension_numbers = #tpu.dot_dimension_numbers<[1], [0], [0], [1], [0, 0, 1, 1], [], []>} : vector<64x32xf32>, vector<32x32xf32>, vector<64x32xf32> -> vector<64x32xf32>
    %c1_31 = arith.constant 1 : index
    %c0_32 = arith.constant 0 : index
    %c0_33 = arith.constant 0 : index
    %42 = vector.load %arg8[%c1_31, %c0_32, %c0_33] : memref<3x1x32xf32, #tpu.memory_space<vmem>>, vector<1x1x32xf32>
    %43 = vector.shape_cast %42 : vector<1x1x32xf32> to vector<1x32xf32>
    %44 = vector.broadcast %43 : vector<1x32xf32> to vector<64x32xf32>
    %45 = arith.addf %41, %44 : vector<64x32xf32>
    %46 = vector.shape_cast %45 : vector<64x32xf32> to vector<8x8x32xf32>
    %c0_34 = arith.constant 0 : index
    %c1_35 = arith.constant 1 : index
    %c0_36 = arith.constant 0 : index
    %c0_37 = arith.constant 0 : index
    %c0_38 = arith.constant 0 : index
    %47 = vector.load %arg9[%c0_34, %c1_35, %c0_36, %c0_37, %c0_38] : memref<1x3x8x8x32xf32, #tpu.memory_space<vmem>>, vector<1x1x8x8x32xf32>
    %48 = vector.shape_cast %47 : vector<1x1x8x8x32xf32> to vector<8x8x32xf32>
    %49 = vector.shape_cast %46 : vector<8x8x32xf32> to vector<1x1x8x8x32xf32>
    tpu.vector_store %arg9[%c0_34, %c1_35, %c0_36, %c0_37, %c0_38], %49 {strides = array<i32>} : memref<1x3x8x8x32xf32, #tpu.memory_space<vmem>>, vector<1x1x8x8x32xf32>,
    %50 = vector.extract_strided_slice %25 {offsets = [0, 64], sizes = [64, 32], strides = [1, 1]} : vector<64x96xf32> to vector<64x32xf32>
    %c2 = arith.constant 2 : index
    %c0_39 = arith.constant 0 : index
    %c0_40 = arith.constant 0 : index
    %51 = vector.load %arg7[%c2, %c0_39, %c0_40] : memref<3x32x32xf32, #tpu.memory_space<vmem>>, vector<1x32x32xf32>
    %52 = vector.shape_cast %51 : vector<1x32x32xf32> to vector<32x32xf32>
    %cst_41 = arith.constant dense<0.000000e+00> : vector<64x32xf32>
    %53 = tpu.matmul %50, %52, %cst_41 {dimension_numbers = #tpu.dot_dimension_numbers<[1], [0], [0], [1], [0, 0, 1, 1], [], []>} : vector<64x32xf32>, vector<32x32xf32>, vector<64x32xf32> -> vector<64x32xf32>
    %c2_42 = arith.constant 2 : index
    %c0_43 = arith.constant 0 : index
    %c0_44 = arith.constant 0 : index
    %54 = vector.load %arg8[%c2_42, %c0_43, %c0_44] : memref<3x1x32xf32, #tpu.memory_space<vmem>>, vector<1x1x32xf32>
    %55 = vector.shape_cast %54 : vector<1x1x32xf32> to vector<1x32xf32>
    %56 = vector.broadcast %55 : vector<1x32xf32> to vector<64x32xf32>
    %57 = arith.addf %53, %56 : vector<64x32xf32>
    %58 = vector.shape_cast %57 : vector<64x32xf32> to vector<8x8x32xf32>
    %c0_45 = arith.constant 0 : index
    %c2_46 = arith.constant 2 : index
    %c0_47 = arith.constant 0 : index
    %c0_48 = arith.constant 0 : index
    %c0_49 = arith.constant 0 : index
    %59 = vector.load %arg9[%c0_45, %c2_46, %c0_47, %c0_48, %c0_49] : memref<1x3x8x8x32xf32, #tpu.memory_space<vmem>>, vector<1x1x8x8x32xf32>
    %60 = vector.shape_cast %59 : vector<1x1x8x8x32xf32> to vector<8x8x32xf32>
    %61 = vector.shape_cast %58 : vector<8x8x32xf32> to vector<1x1x8x8x32xf32>
    tpu.vector_store %arg9[%c0_45, %c2_46, %c0_47, %c0_48, %c0_49], %61 {strides = array<i32>} : memref<1x3x8x8x32xf32, #tpu.memory_space<vmem>>, vector<1x1x8x8x32xf32>,
    return
  }
  func.func @transform_0(%arg0: i32) -> (i32, i32, i32) {
    %c0_i32 = arith.constant 0 : i32
    %c0_i32_0 = arith.constant 0 : i32
    %c0_i32_1 = arith.constant 0 : i32
    return %arg0, %c0_i32, %c0_i32_0 : i32, i32, i32
  }
  func.func @transform_1(%arg0: i32) -> (i32, i32, i32, i32) {
    %c0_i32 = arith.constant 0 : i32
    %c0_i32_0 = arith.constant 0 : i32
    %c0_i32_1 = arith.constant 0 : i32
    %c0_i32_2 = arith.constant 0 : i32
    return %arg0, %c0_i32, %c0_i32_0, %c0_i32_1 : i32, i32, i32, i32
  }
  func.func @transform_2(%arg0: i32) -> (i32, i32) {
    %c0_i32 = arith.constant 0 : i32
    %c0_i32_0 = arith.constant 0 : i32
    %c0_i32_1 = arith.constant 0 : i32
    return %c0_i32, %c0_i32_0 : i32, i32
  }
  func.func @transform_3(%arg0: i32) -> (i32, i32) {
    %c0_i32 = arith.constant 0 : i32
    %c0_i32_0 = arith.constant 0 : i32
    %c0_i32_1 = arith.constant 0 : i32
    return %c0_i32, %c0_i32_0 : i32, i32
  }
  func.func @transform_4(%arg0: i32) -> (i32, i32) {
    %c0_i32 = arith.constant 0 : i32
    %c0_i32_0 = arith.constant 0 : i32
    %c0_i32_1 = arith.constant 0 : i32
    return %c0_i32, %c0_i32_0 : i32, i32
  }
  func.func @transform_5(%arg0: i32) -> (i32, i32) {
    %c0_i32 = arith.constant 0 : i32
    %c0_i32_0 = arith.constant 0 : i32
    %c0_i32_1 = arith.constant 0 : i32
    return %c0_i32, %c0_i32_0 : i32, i32
  }
  func.func @transform_6(%arg0: i32) -> (i32, i32, i32) {
    %c0_i32 = arith.constant 0 : i32
    %c0_i32_0 = arith.constant 0 : i32
    %c0_i32_1 = arith.constant 0 : i32
    %c0_i32_2 = arith.constant 0 : i32
    return %c0_i32, %c0_i32_0, %c0_i32_1 : i32, i32, i32
  }
  func.func @transform_7(%arg0: i32) -> (i32, i32, i32) {
    %c0_i32 = arith.constant 0 : i32
    %c0_i32_0 = arith.constant 0 : i32
    %c0_i32_1 = arith.constant 0 : i32
    %c0_i32_2 = arith.constant 0 : i32
    return %c0_i32, %c0_i32_0, %c0_i32_1 : i32, i32, i32
  }
  func.func @transform_8(%arg0: i32) -> (i32, i32, i32, i32, i32) {
    %c0_i32 = arith.constant 0 : i32
    %c0_i32_0 = arith.constant 0 : i32
    %c0_i32_1 = arith.constant 0 : i32
    %c0_i32_2 = arith.constant 0 : i32
    %c0_i32_3 = arith.constant 0 : i32
    return %arg0, %c0_i32, %c0_i32_0, %c0_i32_1, %c0_i32_2 : i32, i32, i32, i32, i32
  }
}

</mosaic_0001>

<bundles_post_ra>
// kernel: tpu_custom_call.1
= control target key start
LH: loop header
LB: loop body
LE: loop exit
PB: predicated region body
PF: predicated region fallthrough
CT: control target
= control target key end

     0   :  { %13 = vsyncpa [#allocation3], 0  ;;  %s1976_s0 = inlined_call_operand.vmem [shape: f32[2,8,16], index: 0, kind: input, shape index: {}]   ;;  %s1977_s1 = inlined_call_operand.vmem [shape: f32[2,8,8,3], index: 1, kind: input, shape index: {}]   ;;  %s1978_s2 = inlined_call_operand.vmem [shape: f32[16,96], index: 2, kind: input, shape index: {}]   ;;  %s1979_s3 = inlined_call_operand.vmem [shape: f32[1,96], index: 3, kind: input, shape index: {}]   ;;  %s1980_s4 = inlined_call_operand.vmem [shape: f32[3,96], index: 4, kind: input, shape index: {}]   ;;  %s1981_s5 = inlined_call_operand.vmem [shape: f32[1,96], index: 5, kind: input, shape index: {}]   ;;  %s1982_s6 = inlined_call_operand.vmem [shape: f32[3,32,32], index: 6, kind: input, shape index: {}]   ;;  %s1983_s7 = inlined_call_operand.vmem [shape: f32[3,1,32], index: 7, kind: input, shape index: {}]   ;;  %s1984_s8 = inlined_call_operand.hbm [shape: f32[2,3,8,8,32], index: 8, kind: output, shape index: {}]  }
   0x1   :  { %15 = vsyncpa [#allocation3 + $0x1], 0  ;;  %s1672_s27 = smov 0   ;;  %s1674_s28 = smov 0  }
   0x2   :  { %s1676_s29 = smov 0   ;;  %s1678_s30 = smov 0  }
   0x3 LB: > { %s1693_s9 = sadd.s32 4294967295, %s1617_s30   ;;  %s1264_s10 = sadd.s32 4294967294, %s1617_s30   ;;  %s1617_s30 = sphi %s1678_s30, %s1990_s30   ;;  %s1613_s29 = sphi %s1676_s29, %s1989_s29   ;;  %s1609_s28 = sphi %s1674_s28, %s1988_s28   ;;  %s1605_s27 = sphi %s1672_s27, %s1987_s27  }
   0x4   : > { %s1697_s11 = sadd.s32 1, %s1617_s30   ;;  %s206_s12 = sadd.s32 1, %s1613_s29 }
   0x5   : > { %s203_s13 = ssub.s32 %s1617_s30, %s1697_s11  ;;  %p216_p0 = scmp.ne.s32.totalorder %s1613_s29, %s1609_s28 }
   0x6   : > { %p204_p1 = scmp.eq.s32.totalorder %s203_s13, 0  ;;  %p217_p2 = scmp.eq.s32.totalorder %s1693_s9, 1 }
   0x7   : > { %p222_p3 = scmp.ne.s32.totalorder %s1609_s28, %s1605_s27  ;;  %p223_p4 = scmp.eq.s32.totalorder %s1264_s10, 1 }
   0x8   : > { %s1708_s14 = scalar_select %p204_p1, %s1613_s29, %s206_s12  }
   0x9   : > { %p1710_p5 = por %p217_p2, %p216_p0  ;;  %p1714_p6 = por %p223_p4, %p222_p3 }
   0xa   : > { %p1267_p7 = scmp.ge.s32.totalorder %s1617_s30, 1  ;;  %p274_p8 = scmp.lt.s32.totalorder %s1617_s30, 3 }
   0xc   : > { %p275_p9 = pnand %p1267_p7, %p274_p8 }
   0xd   : > { %p312_p10 = scmp.lt.s32.totalorder (!%p275_p9), %s1693_s9, 1  ;;  %s309_s23 = sand.u32 (!%p275_p9), 1, %s1609_s28  }
   0xe   : > { %278 = sbr.rel (%p275_p9) target bundleno = 617 (0x269), region = 52  ;;  %s1624_s26 = smov (!%p275_p9), [#allocation2]  }
   0xf   : > { %s1478_s19 = smul.u32 (!%p275_p9), 3072, %s1693_s9 }
  0x13   : > { %v331_v0 = vld [vmem:[%s1978_s2 + $0x8] sm:$0xff]  ;;  %v1619_v1 = vmov 0.0   ;;  %v330_v2 = vld [vmem:[%s1978_s2] sm:$0xff]  ;;  %vm1620_vm0 = vmmov 0   ;;  %s313_s21 = scalar_select %p312_p10, %s1693_s9, 1  ;;  %vm446_vm1 = vcmask 1042432   ;;  %v560_v23 = vlaneseq }
  0x14   : > { %1396 = vmatprep.subr.mxu1 %v1619_v1  ;;  %1400 = vmatprep.mubr.msk.f32.mxu1 %vm1620_vm0, %v1619_v1  ;;  %v413_v3 = vld [vmem:[%s1980_s4] sm:$0x7]  ;;  %vm339_vm2 = vcmask 130048   ;;  %vm421_vm3 = vcmask 23552   ;;  %v712_v13 = vld [vmem:[%s1982_s6 + $0x18] sm:$0xff]  ;;  %v711_v14 = vld [vmem:[%s1982_s6 + $0x10] sm:$0xff] }
  0x15   : > { %1397 = vmatpush3.msra.mxu1 %v331_v0  ;;  %s1268_s24 = sshll.u32 %s313_s21, 3  ;;  %s1347_s25 = sshll.u32 %s313_s21, 6  ;;  %1417 = vmatprep.subr.mxu0 %v712_v13  ;;  %v710_v15 = vld [vmem:[%s1982_s6 + $0x8] sm:$0xff]  ;;  %v709_v16 = vld [vmem:[%s1982_s6] sm:$0xff]  ;;  %v1303_v17 = vld [vmem:[%s1982_s6 + $0x38] sm:$0xff]  ;;  %v561_v25 = vshrl.u32 %v560_v23, 7 }
  0x16   : > { %1398 = vmatprep.subr.mxu1 %v1619_v1  ;;  %s315_s12 = scalar_lea.vmem %s1976_s0, %s1268_s24  ;;  %s320_s18 = scalar_lea.vmem %s1977_s1, %s1347_s25  ;;  %1418 = vmatpush3.msra.mxu0 %v712_v13  ;;  %v1302_v18 = vld [vmem:[%s1982_s6 + $0x30] sm:$0xff]  ;;  %v1766_v19 = vld [vmem:[%s1982_s6 + $0x58] sm:$0xff]  ;;  %v1301_v20 = vld [vmem:[%s1982_s6 + $0x28] sm:$0xff]  ;;  %v1621_v21 = vmov 1966171168   ;;  %vm720_vm4 = vcmask 261120  }
  0x17   : > { %1399 = vmatpush3.msra.mxu1 %v330_v2  ;;  %v321_v4 = vld [vmem:[%s315_s12] sm:$0xff]  ;;  %v323_v6 = vld [vmem:[%s320_s18 + $0x8] sm:$0xff]  ;;  %v324_v7 = vld [vmem:[%s320_s18 + $0x10] sm:$0xff]  ;;  %1419 = vmatprep.subr.mxu0 %v711_v14  ;;  %v558_v22 = vunpack.c.l.s4 %v1621_v21  ;;  %v607_v33 = vsub.s32 0, %v561_v25  ;;  %s1622_s12 = smov 96   ;;  %s1477_s24 = smul.u32 192, %s309_s23 }
  0x18   : > { %1403 = vmatprep.subr.msk.mxu1 %vm446_vm1, %v413_v3  ;;  %v322_v5 = vld [vmem:[%s320_s18] sm:$0xff]  ;;  %1401 = vmatmul.mubr.msk.f32.vlgmr.msra.gmra.mxu1 %vm339_vm2, %v321_v4  ;;  %v325_v8 = vld [vmem:[%s320_s18 + $0x18] sm:$0xff]  ;;  %v327_v10 = vld [vmem:[%s320_s18 + $0x28] sm:$0xff]  ;;  %s1936_s9 = scalar_lea.sflag [#allocation3], %s309_s23 }
  0x19   : > { %1404 = vmatpush3.msk.msra.mxu1 %vm446_vm1, %v413_v3  ;;  %1405 = vmatprep.mubr.msk.f32.mxu1 %vm421_vm3, %v322_v5  ;;  %v326_v9 = vld [vmem:[%s320_s18 + $0x20] sm:$0xff]  ;;  %v328_v11 = vld [vmem:[%s320_s18 + $0x30] sm:$0xff]  ;;  %v329_v12 = vld [vmem:[%s320_s18 + $0x38] sm:$0xff]  ;;  %v559_v24 = vunpack.c.0.s8 %v558_v22  ;;  %s1623_s18 = smov 64   ;;  %s1869_s10 = scalar_lea.vmem [#allocation2], %s1477_s24 }
  0x1a   : > { %1420 = vmatpush3.msra.mxu0 %v711_v14  ;;  %1437 = vmatprep.subr.mxu1 %v1303_v17  ;;  %v1271_v26 = vld [vmem:[%s1979_s3] ss:$0 sm:$0xff]  ;;  %s1190_s20 = sshll.u32 %s1869_s10, 4  ;;  %s1924_s24 = scalar_lea.hbm %s1984_s8, %s1478_s19  ;;  %s1930_s20 = int_to_ptr.vmem [resolvable:$true] %s1190_s20 }
  0x1b   : > { %1421 = vmatprep.subr.mxu0 %v710_v15  ;;  %v562_v27 = vsub.s32 %v559_v24, %v561_v25  ;;  %v1273_v35 = vld [vmem:[%s1981_s5] ss:$0 sm:$0xff]  ;;  %s1557_s25 = scalar_lea.vmem %s1930_s20, 3072 }
  0x1c   : > { %1406 = vmatmul.mubr.msk.f32.vlgmr.msra.gmra.mxu1 %vm421_vm3, %v323_v6  ;;  %1422 = vmatpush3.msra.mxu0 %v710_v15  ;;  %p1558_p11 = scmp.ne.s32.totalorder %s1930_s20, %s1557_s25 }
  0x1d   : > { %1408 = vmatprep.mubr.msk.f32.mxu1 %vm421_vm3, %v324_v7  ;;  %1423 = vmatprep.subr.mxu0 %v709_v16 }
  0x1e   : > { %1424 = vmatpush3.msra.mxu0 %v709_v16  ;;  %1438 = vmatpush3.msra.mxu1 %v1303_v17  ;;  %p1559_p12 = pnand %p1558_p11, %p1710_p5 }
  0x1f   : > { %1457 = vmatprep.subr.mxu0 %v1766_v19  ;;  %1439 = vmatprep.subr.mxu1 %v1302_v18 }
  0x20   : > { %1409 = vmatmul.mubr.msk.f32.gmra.mxu1 %vm421_vm3, %v325_v8  ;;  %p1560_p13 = pneg %p1559_p12 }
  0x21   : > { %1411 = vmatprep.mubr.msk.f32.mxu1 %vm421_vm3, %v326_v9  ;;  %1440 = vmatpush3.msra.mxu1 %v1302_v18 }
  0x22   : > { %1441 = vmatprep.subr.mxu1 %v1301_v20 }
  0x23   : > { %1442 = vmatpush3.msra.mxu1 %v1301_v20 }
  0x24   : > { %1412 = vmatmul.mubr.msk.f32.gmra.mxu1 %vm421_vm3, %v327_v10 }
  0x25   : > { %1414 = vmatprep.mubr.msk.f32.mxu1 %vm421_vm3, %v328_v11 }
  0x28   : > { %1415 = vmatmul.mubr.msk.f32.gmra.mxu1 %vm421_vm3, %v329_v12 }
  0xd8   : > { %v409_v28 = vpop.f32.mrf.mxu1 }
  0xd9   : > { %v410_v29 = vadd.f32 %v1271_v26, %v409_v28 }
  0xda   : > { %v1402_v30 = vpop.f32.mrf.mxu1 }
  0xdb   : > { %v556_v31 = vcombine.high %v410_v29, %v410_v29  ;;  %v563_v32 = vrot.slane %v410_v29, %v562_v27  ;;  %v1300_v30 = vld [vmem:[%s1982_s6 + $0x20] sm:$0xff] }
  0xdc   : > { %v1407_v34 = vpop.f32.mrf.mxu1  ;;  %1443 = vmatprep.subr.mxu1 %v1300_v30 }
  0xdd   : > { %v570_v36 = vrot.slane %v556_v31, %v562_v27  ;;  %v571_v37 = vcombine.high %v563_v32, %v563_v32  ;;  %v579_v38 = vrot.slane %v563_v32, %v562_v27  ;;  %v522_v44 = vadd.f32 %v1407_v34, %v1273_v35  ;;  %1444 = vmatpush3.msra.mxu1 %v1300_v30 }
  0xde   : > { %v516_v39 = vpop.f32.mrf.mxu1 }
  0xdf   : > { %v572_v40 = vcombine.high %v570_v36, %v570_v36  ;;  %v593_v41 = vrot.slane %v571_v37, %v562_v27  ;;  %v517_v42 = vadd.f32 %v1273_v35, %v516_v39  ;;  %v608_v43 = vrot.slane %v579_v38, %v607_v33 }
  0xe0   : > { %v1410_v45 = vpop.f32.mrf.mxu1  ;;  %v601_v46 = vcombine.high %v579_v38, %v579_v38  ;;  %v586_v54 = vrot.slane %v570_v36, %v562_v27 }
  0xe1   : > { %v612_v47 = vrot.slane %v593_v41, %v607_v33  ;;  %v1778_v48 = vadd.f32 %v608_v43, %v517_v42  ;;  %v532_v49 = vadd.f32 %v1410_v45, %v1273_v35  ;;  %v603_v50 = vcombine.high %v593_v41, %v593_v41  ;;  %v1324_v45 = vld [vmem:[%s1982_s6 + $0x50] sm:$0xff] }
  0xe2   : > { %v526_v51 = vpop.f32.mrf.mxu1  ;;  %v616_v52 = vrot.slane %v601_v46, %v607_v33  ;;  %v600_v53 = vrot.slane %v572_v40, %v562_v27  ;;  %v624_v3 = vrot.slane %v586_v54, %v607_v33  ;;  %v602_v4 = vcombine.high %v586_v54, %v586_v54  ;;  %v1322_v54 = vld [vmem:[%s1982_s6 + $0x40] sm:$0xff] }
  0xe3   : > { %v1780_v55 = vadd.f32 %v612_v47, %v522_v44  ;;  %v1283_v56 = vmul.f32 -1.442695, %v1778_v48  ;;  %v620_v57 = vrot.slane %v603_v50, %v607_v33  ;;  %v527_v58 = vadd.f32 %v1273_v35, %v526_v51  ;;  %v1323_v50 = vld [vmem:[%s1982_s6 + $0x48] sm:$0xff] }
  0xe4   : > { %v1413_v59 = vpop.f32.mrf.mxu1  ;;  %v604_v60 = vcombine.high %v600_v53, %v600_v53  ;;  %v628_v1 = vrot.slane %v600_v53, %v607_v33  ;;  %v632_v18 = vrot.slane %v602_v4, %v607_v33 }
  0xe5   : > { %v1284_v61 = vmul.f32 -1.442695, %v1780_v55  ;;  %1525 = vpow2.f32 %v1283_v56  ;;  %v1784_v62 = vadd.f32 %v620_v57, %v532_v49  ;;  %v1786_v63 = vadd.f32 %v616_v52, %v527_v58 }
  0xe6   : > { %v542_v0 = vadd.f32 %v1413_v59, %v1273_v35  ;;  %v536_v2 = vpop.f32.mrf.mxu1  ;;  %v636_v12 = vrot.slane %v604_v60, %v607_v33 }
  0xe7   : > { %1527 = vpow2.f32 %v1284_v61  ;;  %v1286_v5 = vmul.f32 -1.442695, %v1784_v62  ;;  %v1285_v6 = vmul.f32 -1.442695, %v1786_v63  ;;  %v537_v7 = vadd.f32 %v1273_v35, %v536_v2 }
  0xe8   : > { %v1790_v8 = vadd.f32 %v628_v1, %v542_v0  ;;  %v1416_v9 = vpop.f32.mrf.mxu1 }
  0xe9   : > { %1529 = vpow2.f32 %v1286_v5  ;;  %v1792_v10 = vadd.f32 %v624_v3, %v537_v7  ;;  %v552_v11 = vadd.f32 %v1416_v9, %v1273_v35 }
  0xea   : > { %1531 = vpow2.f32 %v1285_v6  ;;  %v1288_v13 = vmul.f32 -1.442695, %v1790_v8  ;;  %v546_v14 = vpop.f32.mrf.mxu1 }
  0xeb   : > { %v1287_v15 = vmul.f32 -1.442695, %v1792_v10  ;;  %v1796_v16 = vadd.f32 %v636_v12, %v552_v11  ;;  %v547_v17 = vadd.f32 %v1273_v35, %v546_v14 }
  0xec   : > { %1533 = vpow2.f32 %v1288_v13 }
  0xed   : > { %1535 = vpow2.f32 %v1287_v15  ;;  %v1290_v20 = vmul.f32 -1.442695, %v1796_v16  ;;  %v1799_v21 = vadd.f32 %v632_v18, %v547_v17 }
  0xef   : > { %1537 = vpow2.f32 %v1290_v20  ;;  %v1289_v22 = vmul.f32 -1.442695, %v1799_v21 }
  0xf1   : > { %1539 = vpow2.f32 %v1289_v22 }
  0xf2   : > { %v1526_v23 = vpop.eup %1525 }
  0xf3   : > { %v677_v24 = vadd.f32 1.0, %v1526_v23 }
  0xf4   : > { %v1528_v25 = vpop.eup %1527 }
  0xf5   : > { %v678_v26 = vadd.f32 1.0, %v1528_v25  ;;  %1541 = vrcp.f32 %v677_v24 }
  0xf6   : > { %v1530_v27 = vpop.eup %1529 }
  0xf7   : > { %v1532_v28 = vpop.eup %1531  ;;  %1543 = vrcp.f32 %v678_v26  ;;  %v680_v29 = vadd.f32 1.0, %v1530_v27 }
  0xf8   : > { %v679_v31 = vadd.f32 1.0, %v1532_v28  ;;  %v1305_v28 = vld [vmem:[%s1983_s7 + $0x1] ss:$0 sm:$0xff] }
  0xf9   : > { %v1534_v32 = vpop.eup %1533  ;;  %1545 = vrcp.f32 %v680_v29 }
  0xfa   : > { %v1536_v33 = vpop.eup %1535  ;;  %1547 = vrcp.f32 %v679_v31  ;;  %v682_v34 = vadd.f32 1.0, %v1534_v32  ;;  %v1327_v32 = vld [vmem:[%s1983_s7 + $0x2] ss:$0 sm:$0xff] }
  0xfb   : > { %v681_v35 = vadd.f32 1.0, %v1536_v33 }
  0xfc   : > { %v1538_v36 = vpop.eup %1537  ;;  %1549 = vrcp.f32 %v682_v34 }
  0xfd   : > { %1551 = vrcp.f32 %v681_v35  ;;  %v684_v37 = vadd.f32 1.0, %v1538_v36 }
  0xfe   : > { %v1540_v38 = vpop.eup %1539 }
  0xff   : > { %v683_v39 = vadd.f32 1.0, %v1540_v38  ;;  %1553 = vrcp.f32 %v684_v37 }
 0x101   : > { %1555 = vrcp.f32 %v683_v39 }
 0x102   : > { %v1542_v40 = vpop.eup %1541 }
 0x103   : > { %v701_v41 = vmul.f32 %v1542_v40, %v1778_v48 }
 0x104   : > { %v1544_v42 = vpop.eup %1543 }
 0x105   : > { %871 = vrot.lane.b32.xlu0 %v701_v41, %s1622_s12  ;;  %1425 = vmatprep.mubr.msk.f32.mxu0 %vm720_vm4, %v701_v41  ;;  %v702_v43 = vmul.f32 %v1544_v42, %v1780_v55 }
 0x106   : > { %v1546_v44 = vpop.eup %1545 }
 0x107   : > { %v1548_v46 = vpop.eup %1547  ;;  %873 = vrot.lane.b32.xlu1 %v702_v43, %s1622_s12  ;;  %1426 = vmatmul.mubr.msk.f32.vlgmr.msra.gmra.mxu0 %vm720_vm4, %v702_v43  ;;  %v704_v49 = vmul.f32 %v1546_v44, %v1784_v62 }
 0x108   : > { %v703_v47 = vmul.f32 %v1548_v46, %v1786_v63  ;;  %1458 = vmatpush3.msra.mxu0 %v1766_v19 }
 0x109   : > { %v1550_v48 = vpop.eup %1549  ;;  %1030 = vrot.lane.b32.xlu0 %v701_v41, %s1623_s18  ;;  %1459 = vmatprep.subr.mxu0 %v1324_v45 }
 0x10a   : > { %v1552_v51 = vpop.eup %1551  ;;  %1428 = vmatprep.mubr.msk.f32.mxu0 %vm720_vm4, %v703_v47  ;;  %1460 = vmatpush3.msra.mxu0 %v1324_v45  ;;  %v706_v53 = vmul.f32 %v1550_v48, %v1790_v8 }
 0x10b   : > { %v705_v52 = vmul.f32 %v1552_v51, %v1792_v10  ;;  %1032 = vrot.lane.b32.xlu1 %v702_v43, %s1623_s18  ;;  %1429 = vmatmul.mubr.msk.f32.gmra.mxu0 %vm720_vm4, %v704_v49  ;;  %v1291_v10 = vld [vmem:[%s1983_s7] ss:$0 sm:$0xff] }
 0x10c   : > { %1461 = vmatprep.subr.mxu0 %v1323_v50  ;;  %v1554_v19 = vpop.eup %1553 }
 0x10d   : > { %875 = vrot.lane.b32.xlu0 %v703_v47, %s1622_s12  ;;  %1431 = vmatprep.mubr.msk.f32.mxu0 %vm720_vm4, %v705_v52  ;;  %v708_v57 = vmul.f32 %v1554_v19, %v1796_v16 }
 0x10e   : > { %v1556_v55 = vpop.eup %1555  ;;  %1462 = vmatpush3.msra.mxu0 %v1323_v50 }
 0x10f   : > { %v707_v56 = vmul.f32 %v1556_v55, %v1799_v21  ;;  %1034 = vrot.lane.b32.xlu1 %v703_v47, %s1623_s18  ;;  %1432 = vmatmul.mubr.msk.f32.gmra.mxu0 %vm720_vm4, %v706_v53 }
 0x110   : > { %1463 = vmatprep.subr.mxu0 %v1322_v54 }
 0x111   : > { %877 = vrot.lane.b32.xlu0 %v704_v49, %s1622_s12  ;;  %1434 = vmatprep.mubr.msk.f32.mxu0 %vm720_vm4, %v707_v56 }
 0x112   : > { %1464 = vmatpush3.msra.mxu0 %v1322_v54 }
 0x113   : > { %1036 = vrot.lane.b32.xlu1 %v704_v49, %s1623_s18  ;;  %1435 = vmatmul.mubr.msk.f32.gmra.mxu0 %vm720_vm4, %v708_v57 }
 0x115   : > { %881 = vrot.lane.b32.xlu0 %v706_v53, %s1622_s12 }
 0x117   : > { %1040 = vrot.lane.b32.xlu1 %v706_v53, %s1623_s18 }
 0x119   : > { %879 = vrot.lane.b32.xlu0 %v705_v52, %s1622_s12 }
 0x11b   : > { %1038 = vrot.lane.b32.xlu1 %v705_v52, %s1623_s18 }
 0x11d   : > { %883 = vrot.lane.b32.xlu0 %v707_v56, %s1622_s12 }
 0x11f   : > { %1042 = vrot.lane.b32.xlu1 %v707_v56, %s1623_s18 }
 0x121   : > { %885 = vrot.lane.b32.xlu0 %v708_v57, %s1622_s12  ;;  %s1561_s12 = sshll.u32 %s1624_s26, 4  ;;  %s1562_s12 = int_to_ptr.vmem [resolvable:$false] %s1561_s12 }
 0x122   : > { %s1563_s13 = scalar_lea.vmem %s1562_s12, 6144  ;;  %p1564_p0 = scmp.lt.s32.totalorder %s1930_s20, %s1562_s12 }
 0x123   : > { %1044 = vrot.lane.b32.xlu1 %v708_v57, %s1623_s18  ;;  %p1565_p1 = scmp.lt.s32.totalorder %s1563_s13, %s1557_s25 }
 0x125   : > { %p1566_p2 = por %p1565_p1, %p1564_p0 }
 0x127   : > { %p1567_p3 = pnand %p1566_p2, %p1560_p13 }
 0x177   : > { %v872_v58 = vpop.permute.xlu0 %871 }
 0x178   : > { %1445 = vmatprep.mubr.msk.f32.mxu1 %vm720_vm4, %v872_v58 }
 0x179   : > { %v874_v59 = vpop.permute.xlu1 %873 }
 0x17a   : > { %1446 = vmatmul.mubr.msk.f32.vlgmr.msra.gmra.mxu1 %vm720_vm4, %v874_v59 }
 0x17b   : > { %v1031_v60 = vpop.permute.xlu0 %1030 }
 0x17c   : > { %1465 = vmatprep.mubr.msk.f32.mxu0 %vm720_vm4, %v1031_v60 }
 0x17d   : > { %v1033_v61 = vpop.permute.xlu1 %1032 }
 0x17e   : > { %1466 = vmatmul.mubr.msk.f32.vlgmr.msra.gmra.mxu0 %vm720_vm4, %v1033_v61 }
 0x17f   : > { %v876_v62 = vpop.permute.xlu0 %875 }
 0x180   : > { %1448 = vmatprep.mubr.msk.f32.mxu1 %vm720_vm4, %v876_v62 }
 0x181   : > { %v1035_v63 = vpop.permute.xlu1 %1034 }
 0x182   : > { %1468 = vmatprep.mubr.msk.f32.mxu0 %vm720_vm4, %v1035_v63 }
 0x183   : > { %v878_v0 = vpop.permute.xlu0 %877 }
 0x184   : > { %1449 = vmatmul.mubr.msk.f32.gmra.mxu1 %vm720_vm4, %v878_v0 }
 0x185   : > { %v1037_v1 = vpop.permute.xlu1 %1036 }
 0x186   : > { %1469 = vmatmul.mubr.msk.f32.gmra.mxu0 %vm720_vm4, %v1037_v1 }
 0x187   : > { %v882_v2 = vpop.permute.xlu0 %881 }
 0x189   : > { %v1041_v3 = vpop.permute.xlu1 %1040 }
 0x18b   : > { %v880_v4 = vpop.permute.xlu0 %879 }
 0x18c   : > { %1451 = vmatprep.mubr.msk.f32.mxu1 %vm720_vm4, %v880_v4 }
 0x18d   : > { %v1039_v5 = vpop.permute.xlu1 %1038  ;;  %1452 = vmatmul.mubr.msk.f32.gmra.mxu1 %vm720_vm4, %v882_v2 }
 0x18e   : > { %1471 = vmatprep.mubr.msk.f32.mxu0 %vm720_vm4, %v1039_v5 }
 0x18f   : > { %v884_v6 = vpop.permute.xlu0 %883  ;;  %1472 = vmatmul.mubr.msk.f32.gmra.mxu0 %vm720_vm4, %v1041_v3 }
 0x190   : > { %1454 = vmatprep.mubr.msk.f32.mxu1 %vm720_vm4, %v884_v6 }
 0x191   : > { %v1043_v7 = vpop.permute.xlu1 %1042 }
 0x192   : > { %1474 = vmatprep.mubr.msk.f32.mxu0 %vm720_vm4, %v1043_v7 }
 0x193   : > { %v886_v8 = vpop.permute.xlu0 %885 }
 0x194   : > { %1455 = vmatmul.mubr.msk.f32.gmra.mxu1 %vm720_vm4, %v886_v8 }
 0x195   : > { %v1045_v9 = vpop.permute.xlu1 %1044 }
 0x196   : > { %1475 = vmatmul.mubr.msk.f32.gmra.mxu0 %vm720_vm4, %v1045_v9 }
 0x1c7   : > { %v1427_v11 = vpop.f32.mrf.mxu0 }
 0x1c8   : > { %v817_v12 = vadd.f32 %v1427_v11, %v1291_v10 }
 0x1c9   : > { %v811_v13 = vpop.f32.mrf.mxu0 }
 0x1ca   : > { %851 = vst.msk [vmem:[%s1869_s10 + $0x8] sm:$0xff] %vm720_vm4, %v817_v12  ;;  %v812_v14 = vadd.f32 %v1291_v10, %v811_v13 }
 0x1cb   : > { %v1430_v15 = vpop.f32.mrf.mxu0 }
 0x1cc   : > { %850 = vst.msk [vmem:[%s1869_s10] sm:$0xff] %vm720_vm4, %v812_v14  ;;  %v827_v16 = vadd.f32 %v1430_v15, %v1291_v10 }
 0x1cd   : > { %v821_v17 = vpop.f32.mrf.mxu0 }
 0x1ce   : > { %853 = vst.msk [vmem:[%s1869_s10 + $0x18] sm:$0xff] %vm720_vm4, %v827_v16  ;;  %v822_v18 = vadd.f32 %v1291_v10, %v821_v17 }
 0x1cf   : > { %v1433_v20 = vpop.f32.mrf.mxu0 }
 0x1d0   : > { %852 = vst.msk [vmem:[%s1869_s10 + $0x10] sm:$0xff] %vm720_vm4, %v822_v18  ;;  %v837_v21 = vadd.f32 %v1433_v20, %v1291_v10 }
 0x1d1   : > { %v831_v22 = vpop.f32.mrf.mxu0 }
 0x1d2   : > { %855 = vst.msk [vmem:[%s1869_s10 + $0x28] sm:$0xff] %vm720_vm4, %v837_v21  ;;  %v832_v23 = vadd.f32 %v1291_v10, %v831_v22 }
 0x1d3   : > { %v1436_v24 = vpop.f32.mrf.mxu0 }
 0x1d4   : > { %854 = vst.msk [vmem:[%s1869_s10 + $0x20] sm:$0xff] %vm720_vm4, %v832_v23  ;;  %v847_v25 = vadd.f32 %v1436_v24, %v1291_v10 }
 0x1d5   : > { %v841_v26 = vpop.f32.mrf.mxu0 }
 0x1d6   : > { %857 = vst.msk [vmem:[%s1869_s10 + $0x38] sm:$0xff] %vm720_vm4, %v847_v25  ;;  %v842_v27 = vadd.f32 %v1291_v10, %v841_v26 }
 0x1d8   : > { %856 = vst.msk [vmem:[%s1869_s10 + $0x30] sm:$0xff] %vm720_vm4, %v842_v27 }
 0x23a   : > { %v1447_v29 = vpop.f32.mrf.mxu1 }
 0x23b   : > { %v975_v30 = vadd.f32 %v1447_v29, %v1305_v28 }
 0x23c   : > { %v969_v31 = vpop.f32.mrf.mxu1 }
 0x23d   : > { %1315 = vst.msk [vmem:[%s1869_s10 + $0x48] sm:$0xff] %vm720_vm4, %v975_v30  ;;  %v970_v33 = vadd.f32 %v1305_v28, %v969_v31 }
 0x23e   : > { %v1467_v34 = vpop.f32.mrf.mxu0 }
 0x23f   : > { %1314 = vst.msk [vmem:[%s1869_s10 + $0x40] sm:$0xff] %vm720_vm4, %v970_v33  ;;  %v1134_v35 = vadd.f32 %v1467_v34, %v1327_v32 }
 0x240   : > { %v1128_v36 = vpop.f32.mrf.mxu0 }
 0x241   : > { %1337 = vst.msk [vmem:[%s1869_s10 + $0x88] sm:$0xff] %vm720_vm4, %v1134_v35  ;;  %v1129_v37 = vadd.f32 %v1327_v32, %v1128_v36 }
 0x243   : > { %1336 = vst.msk [vmem:[%s1869_s10 + $0x80] sm:$0xff] %vm720_vm4, %v1129_v37 }
 0x244   : > { %v1450_v38 = vpop.f32.mrf.mxu1 }
 0x245   : > { %v985_v39 = vadd.f32 %v1450_v38, %v1305_v28 }
 0x246   : > { %v979_v40 = vpop.f32.mrf.mxu1  ;;  %v1470_v41 = vpop.f32.mrf.mxu0 }
 0x247   : > { %1317 = vst.msk [vmem:[%s1869_s10 + $0x58] sm:$0xff] %vm720_vm4, %v985_v39  ;;  %v980_v42 = vadd.f32 %v1305_v28, %v979_v40  ;;  %v1144_v43 = vadd.f32 %v1470_v41, %v1327_v32 }
 0x248   : > { %v1138_v44 = vpop.f32.mrf.mxu0 }
 0x249   : > { %1316 = vst.msk [vmem:[%s1869_s10 + $0x50] sm:$0xff] %vm720_vm4, %v980_v42  ;;  %1339 = vst.msk [vmem:[%s1869_s10 + $0x98] sm:$0xff] %vm720_vm4, %v1144_v43  ;;  %v1139_v45 = vadd.f32 %v1327_v32, %v1138_v44 }
 0x24b   : > { %1338 = vst.msk [vmem:[%s1869_s10 + $0x90] sm:$0xff] %vm720_vm4, %v1139_v45 }
 0x24d   : > { %v1453_v46 = vpop.f32.mrf.mxu1 }
 0x24e   : > { %v995_v47 = vadd.f32 %v1453_v46, %v1305_v28 }
 0x24f   : > { %v989_v48 = vpop.f32.mrf.mxu1  ;;  %v1473_v49 = vpop.f32.mrf.mxu0 }
 0x250   : > { %1319 = vst.msk [vmem:[%s1869_s10 + $0x68] sm:$0xff] %vm720_vm4, %v995_v47  ;;  %v990_v50 = vadd.f32 %v1305_v28, %v989_v48  ;;  %v1154_v51 = vadd.f32 %v1473_v49, %v1327_v32 }
 0x251   : > { %v1148_v52 = vpop.f32.mrf.mxu0 }
 0x252   : > { %1318 = vst.msk [vmem:[%s1869_s10 + $0x60] sm:$0xff] %vm720_vm4, %v990_v50  ;;  %1341 = vst.msk [vmem:[%s1869_s10 + $0xa8] sm:$0xff] %vm720_vm4, %v1154_v51  ;;  %v1149_v19 = vadd.f32 %v1327_v32, %v1148_v52 }
 0x254   : > { %1340 = vst.msk [vmem:[%s1869_s10 + $0xa0] sm:$0xff] %vm720_vm4, %v1149_v19  ;;  %v1456_v53 = vpop.f32.mrf.mxu1 }
 0x255   : > { %v1005_v54 = vadd.f32 %v1456_v53, %v1305_v28 }
 0x256   : > { %v999_v55 = vpop.f32.mrf.mxu1  ;;  %v1476_v56 = vpop.f32.mrf.mxu0 }
 0x257   : > { %1321 = vst.msk [vmem:[%s1869_s10 + $0x78] sm:$0xff] %vm720_vm4, %v1005_v54  ;;  %v1000_v57 = vadd.f32 %v1305_v28, %v999_v55  ;;  %v1164_v58 = vadd.f32 %v1476_v56, %v1327_v32 }
 0x258   : > { %v1158_v59 = vpop.f32.mrf.mxu0 }
 0x259   : > { %1320 = vst.msk [vmem:[%s1869_s10 + $0x70] sm:$0xff] %vm720_vm4, %v1000_v57  ;;  %1343 = vst.msk [vmem:[%s1869_s10 + $0xb8] sm:$0xff] %vm720_vm4, %v1164_v58  ;;  %v1159_v60 = vadd.f32 %v1327_v32, %v1158_v59 }
 0x25b   : > { %1342 = vst.msk [vmem:[%s1869_s10 + $0xb0] sm:$0xff] %vm720_vm4, %v1159_v60 }
 0x25c   : > { %1570 = shalt.err (!%p1567_p3)
}
 0x25d   : > { %s1571_s23 = scalar_lea.hbm %s1924_s24, 3072  ;;  %s1575_s18 = scalar_lea.hbm %s1984_s8, 6144 }
 0x25e   : > { %p1572_p4 = scmp.ne.s32.totalorder %s1924_s24, %s1571_s23  ;;  %p1576_p9 = scmp.lt.s32.totalorder %s1924_s24, %s1984_s8 }
 0x25f   : > { %p1577_p10 = scmp.lt.s32.totalorder %s1575_s18, %s1571_s23 }
 0x260   : > { %p1573_p7 = pnand %p1572_p4, %p1710_p5 }
 0x261   : > { %p1578_p11 = por %p1577_p10, %p1576_p9 }
 0x262   : > { %p1574_p8 = pneg %p1573_p7 }
 0x264   : > { %p1579_p12 = pnand %p1578_p11, %p1574_p8 }
 0x266   : > { %1582 = shalt.err (!%p1579_p12)
}
 0x267   : > { %s1625_s22 = smov 128   ;;  %s1626_s25 = smov 8  }
 0x268   : > { %1479 = dma.vmem_to_hbm [thread:$0]  (%p1710_p5), %s1930_s20, 3072, %s1924_s24, %s1936_s9, %s1625_s22, %s1625_s22, %s1626_s25  }
 0x269 PF: > { %p1485_p13 = scmp.ge.s32.totalorder %s1617_s30, 2  ;;  %s1205_s26 = sand.u32 1, %s1605_s27  }
 0x26a   : > { %s1206_s12 = scalar_lea.sflag [#allocation3], %s1205_s26 }
 0x26b   : > { %p1482_p0 = pnand %p1485_p13, %p1714_p6 }
 0x26d   : > { %p1483_p1 = pneg %p1482_p0 }
 0x26f   : > { %1600 = dma.done.wait (%p1483_p1), %s1206_s12, 3072  }
 0x270   : > { %1602 = vsyncadd (%p1483_p1), %s1206_s12, 4294964224  ;;  %p18_p2 = scmp.ge.s32.totalorder %s1697_s11, 4   ;;  %s1987_s27 = smov %s1609_s28 }
 0x271   : > { %s1988_s28 = smov %s1613_s29  ;;  %s1989_s29 = smov %s1708_s14 }
 0x272   : > { %s1990_s30 = smov %s1697_s11  ;;  %20 = sbr.rel (!%p18_p2) target bundleno = 3 (0x3), region = 96 }
 0x277   :  { %1211 = vsyncpa [#allocation3], 1 }
 0x278   :  { %1213 = vsyncpa [#allocation3 + $0x1], 1 }

</bundles_post_ra>
